<compile_context>
chip_gen: v6e
topology: v6e:2x2x1
jax: 0.10.0
libtpu: 0.0.40
codegen_flags: <defaults>
</compile_context>

<pallas_src>
import functools

import numpy as np
import jax
import jax.numpy as jnp
from jax import lax
from jax.experimental import pallas as pl
from jax.experimental.pallas import tpu as pltpu


# kernel_size == 2 (even) -> pad_sizes = [left=1, right=0, top=1, bottom=0]
PAD_LEFT, PAD_RIGHT, PAD_TOP, PAD_BOTTOM = 1, 0, 1, 0


# ---------------------------------------------------------------------------
# Haar filters (pywt 'haar': dec_lo = [1,1]/sqrt(2), dec_hi = [-1,1]/sqrt(2)),
# mirroring get_filters()/initialization() with kernel_size=2, trainable=False.
# ---------------------------------------------------------------------------
def make_haar_filters():
    inv_sqrt2 = 1.0 / np.sqrt(2.0)
    dec_lo = np.array([inv_sqrt2, inv_sqrt2], dtype=np.float64)
    dec_hi = np.array([-inv_sqrt2, inv_sqrt2], dtype=np.float64)
    f_ll = np.outer(dec_lo, dec_lo)
    f_lh = np.outer(dec_lo, dec_hi)
    f_hl = np.outer(dec_hi, dec_lo)
    f_hh = np.outer(dec_hi, dec_hi)
    return tuple(f.astype(np.float32) for f in (f_ll, f_lh, f_hl, f_hh))


# ---------------------------------------------------------------------------
# Host-side selection-matrix builders (passed to the kernel as resident inputs).
# ---------------------------------------------------------------------------
def _make_col_interleave(seg_w, n_seg):
    """p[b]: (n_seg*seg_w, 2*n_seg*seg_w), p[b, k*seg_w+j, k*2*seg_w+2j+b] = 0.5.

    Block-diagonal over the n_seg lane-folded channel segments; the 0.5 is the
    global Haar scale folded in (so the kernel does no VPU multiplies).
    """
    win = n_seg * seg_w
    p = np.zeros((2, win, 2 * win), np.float32)
    for b in (0, 1):
        for k in range(n_seg):
            for j in range(seg_w):
                p[b, k * seg_w + j, k * 2 * seg_w + 2 * j + b] = 0.5
    return p


def _make_row_interleave(th):
    """q[a]: (2*th, th), q[a, 2i+a, i] = 1  (exact 0/1 row interleave)."""
    q = np.zeros((2, 2 * th, th), np.float32)
    for a in (0, 1):
        for i in range(th):
            q[a, 2 * i + a, i] = 1.0
    return q


# ---------------------------------------------------------------------------
# Fused Pallas kernel.
#   p_ref: (2, tw, 2*tw)  column (lane) interleave, scaled by 0.5, resident
#   q_ref: (2, 2*th, th)  row (sublane) interleave, 0/1, resident
#   ll/lh/hl/hh blocks: (tc, th, tw)  ->  output block: (tc, 2*th, 2*tw)
# ---------------------------------------------------------------------------
def _idwt_fused_kernel(p_ref, q_ref, ll_ref, lh_ref, hl_ref, hh_ref, o_ref,
                       *, tc, th, tw):
    f32 = jnp.float32

    # Batch the channel tile into the matmul M dimension: (tc, th, tw) ->
    # (tc*th, tw).  Pure vreg relabeling when th % 8 == 0 (the tile picker
    # forces tc == 1 otherwise).
    ll = ll_ref[...].reshape(tc * th, tw).astype(f32)
    lh = lh_ref[...].reshape(tc * th, tw).astype(f32)
    hl = hl_ref[...].reshape(tc * th, tw).astype(f32)
    hh = hh_ref[...].reshape(tc * th, tw).astype(f32)

    # Haar butterfly: all taps are +-1/2 (the 1/2 lives in p_ref).
    t0 = ll + hh
    t1 = ll - hh
    t2 = lh + hl
    t3 = lh - hl

    p0 = p_ref[0]                      # -> even output columns
    p1 = p_ref[1]                      # -> odd  output columns

    # Column (lane) interleave on the MXU, batched over the whole channel tile.
    # Exactness relies on Mosaic's full-precision f32 matmul path (validated
    # against the conv reference below).
    u0 = (jnp.dot(t0 + t2, p0, preferred_element_type=f32)
          + jnp.dot(t1 - t3, p1, preferred_element_type=f32))   # even output rows
    u1 = (jnp.dot(t1 + t3, p0, preferred_element_type=f32)
          + jnp.dot(t0 - t2, p1, preferred_element_type=f32))   # odd output rows
    u0 = u0.reshape(tc, th, 2 * tw)
    u1 = u1.reshape(tc, th, 2 * tw)

    q0 = q_ref[0]                      # out row 2i   <- u0 row i
    q1 = q_ref[1]                      # out row 2i+1 <- u1 row i

    for c in range(tc):                # tc <= 4; each iteration stores immediately
        tile = (jnp.dot(q0, u0[c], preferred_element_type=f32)
                + jnp.dot(q1, u1[c], preferred_element_type=f32))
        o_ref[c] = tile.astype(o_ref.dtype)   # dense, lane-aligned store


# ---------------------------------------------------------------------------
# Tiling heuristics (generation-aware via the VMEM-capacity query).
# ---------------------------------------------------------------------------
def _vmem_capacity_bytes():
    try:
        return int(pltpu.get_tpu_info().vmem_capacity_bytes)
    except Exception:
        return 64 * 1024 * 1024        # conservative (v7x-sized) fallback


def _pick_row_tile(h):
    if h <= 128:
        return h
    for t in (128, 256, 64, 32, 16, 8):
        if h % t == 0:
            return t
    return h


def _pick_col_tile(w):
    if w <= 256:
        return w                       # full width (allowed even if < 128)
    for t in (128, 256):               # lane-aligned tiles
        if w % t == 0:
            return t
    return w


def _block_vmem_bytes(tc, th, tw, itemsize):
    """Honest per-step estimate: I/O blocks (double-buffered), f32 temporaries
    (t0..t3, u0/u1, per-channel tile), and the resident P/Q matrices."""
    band = tc * th * tw
    io = 8 * band * itemsize * 2                       # 4 in tiles + out (4x area), x2 buffers
    temps = 14 * band * 4                              # f32 upcasts + butterfly + u planes + tile
    consts = (4 * tw * tw + 4 * th * th) * 4 * 2       # P + Q, x2 buffers
    return io + temps + consts


def _pick_channel_tile(g_count, th, tw, itemsize, budget_bytes, spatial_steps):
    if th % 8 != 0:
        return 1                       # the in-kernel (tc*th) row merge needs th % 8 == 0
    divisors = [d for d in range(1, min(4, g_count) + 1) if g_count % d == 0]

    def fits(d):
        traffic = 8 * d * th * tw * itemsize           # HBM bytes moved per grid step
        return (_block_vmem_bytes(d, th, tw, itemsize) <= budget_bytes
                and traffic <= 4 * 1024 * 1024)

    cands = [d for d in divisors if fits(d)] or [1]

    def steps(d):
        return (g_count // d) * spatial_steps

    for min_steps in (8, 2, 1):        # prefer plenty of steps (pipelining, 2 TCs on v7x)
        sel = [d for d in cands if steps(d) >= min_steps]
        if sel:
            return max(sel)
    return 1


# ---------------------------------------------------------------------------
# Wrapper.
# ---------------------------------------------------------------------------
def idwt_2d_pallas(LL, LH, HL, HH, filters):
    assert LL.ndim == LH.ndim == HL.ndim == HH.ndim == 4
    assert LL.shape == LH.shape == HL.shape == HH.shape
    N, C, H, W = LL.shape
    NC = N * C

    # The in-kernel butterfly is specialized to Haar; verify the supplied
    # filters really are the Haar bank (all cross-correlation taps +-1/2).
    coefs = np.array([[[float(f[1 - a, 1 - b]) for f in filters]
                       for b in (0, 1)] for a in (0, 1)], dtype=np.float64)
    expected = 0.5 * np.array([[[1, 1, 1, 1], [1, -1, 1, -1]],
                               [[1, 1, -1, -1], [1, -1, -1, 1]]], np.float64)
    assert np.allclose(coefs, expected, atol=1e-6), "kernel is specialized to 'haar'"

    # ---- lane-density fold for small W (output width < 128 lanes) ----------
    g = 1
    if 2 * W < 128:
        g_max = max(1, 128 // (2 * W))
        for d in range(min(g_max, NC), 0, -1):
            if NC % d == 0:
                g = d
                break

    bands = [a.reshape(NC, H, W) for a in (LL, LH, HL, HH)]
    if g > 1:
        bands = [b.reshape(NC // g, g, H, W).transpose(0, 2, 1, 3)
                  .reshape(NC // g, H, g * W) for b in bands]
    G, Wf = NC // g, g * W

    th = _pick_row_tile(H)
    tw = _pick_col_tile(Wf)
    assert g == 1 or tw == Wf          # folded width is always <= 256 -> full tile

    cap = _vmem_capacity_bytes()
    vmem_limit = int(min((cap * 3) // 4, 100 * 1024 * 1024))   # ~48 MiB on v7x, ~96 MiB on v5e/v6e
    budget = vmem_limit // 2

    itemsize = np.dtype(LL.dtype).itemsize
    spatial_steps = (H // th) * (Wf // tw)
    tc = _pick_channel_tile(G, th, tw, itemsize, budget, spatial_steps)

    pmat = jnp.asarray(_make_col_interleave(tw // g, g))   # (2, tw, 2*tw)
    qmat = jnp.asarray(_make_row_interleave(th))           # (2, 2*th, th)

    kernel = functools.partial(_idwt_fused_kernel, tc=tc, th=th, tw=tw)
    grid = (G // tc, H // th, Wf // tw)

    const_p_spec = pl.BlockSpec((2, tw, 2 * tw), lambda c, i, j: (0, 0, 0))
    const_q_spec = pl.BlockSpec((2, 2 * th, th), lambda c, i, j: (0, 0, 0))
    in_spec = pl.BlockSpec((tc, th, tw), lambda c, i, j: (c, i, j))
    out_spec = pl.BlockSpec((tc, 2 * th, 2 * tw), lambda c, i, j: (c, i, j))

    out = pl.pallas_call(
        kernel,
        out_shape=jax.ShapeDtypeStruct((G, 2 * H, 2 * Wf), LL.dtype),
        grid=grid,
        in_specs=[const_p_spec, const_q_spec] + [in_spec] * 4,
        out_specs=out_spec,
        compiler_params=pltpu.CompilerParams(
            dimension_semantics=("parallel", "parallel", "parallel"),
            vmem_limit_bytes=vmem_limit,
        ),
    )(pmat, qmat, *bands)

    if g > 1:
        out = (out.reshape(G, 2 * H, g, 2 * W).transpose(0, 2, 1, 3)
                  .reshape(NC, 2 * H, 2 * W))
    return out.reshape(N, C, 2 * H, 2 * W)


# ---------------------------------------------------------------------------
# Pure-JAX reference (explicit upsample + reflect pad + grouped conv),
# matching the PyTorch module step by step.  Used only for the correctness check.
# ---------------------------------------------------------------------------
def _upsample_and_pad(x):
    N, C, H, W = x.shape
    y = jnp.zeros((N, C, 2 * H, 2 * W), x.dtype).at[:, :, ::2, ::2].set(x)
    return jnp.pad(
        y,
        ((0, 0), (0, 0), (PAD_TOP, PAD_BOTTOM), (PAD_LEFT, PAD_RIGHT)),
        mode="reflect",
    )


def idwt_2d_reference(LL, LH, HL, HH, filters):
    N, C, H, W = LL.shape
    dn = lax.conv_dimension_numbers(
        (N, C, 2 * H + 1, 2 * W + 1), (C, 1, 2, 2), ("NCHW", "OIHW", "NCHW")
    )
    out = jnp.zeros((N, C, 2 * H, 2 * W), jnp.float32)
    for x, f in zip((LL, LH, HL, HH), filters):
        p = _upsample_and_pad(x).astype(jnp.float32)
        rhs = jnp.broadcast_to(jnp.asarray(f, jnp.float32)[None, None], (C, 1, 2, 2))
        out = out + lax.conv_general_dilated(
            p, rhs, window_strides=(1, 1), padding="VALID",
            dimension_numbers=dn, feature_group_count=C,
        )
    return out.astype(LL.dtype)


if __name__ == "__main__":
    filters = make_haar_filters()

    # Primary shape implied by the module usage (small bands) exercises the
    # lane-folded path; the third shape exercises the general path with tc > 1.
    shapes = [(2, 4, 16, 16), (1, 3, 8, 8), (1, 4, 16, 64)]
    key = jax.random.PRNGKey(0)
    for (N, C, H, W) in shapes:
        key, k1, k2, k3, k4 = jax.random.split(key, 5)
        LL = jax.random.normal(k1, (N, C, H, W), dtype=jnp.float32)
        LH = jax.random.normal(k2, (N, C, H, W), dtype=jnp.float32)
        HL = jax.random.normal(k3, (N, C, H, W), dtype=jnp.float32)
        HH = jax.random.normal(k4, (N, C, H, W), dtype=jnp.float32)

        out = jax.block_until_ready(idwt_2d_pallas(LL, LH, HL, HH, filters))
        assert out.shape == (N, C, 2 * H, 2 * W)

        ref = jax.block_until_ready(idwt_2d_reference(LL, LH, HL, HH, filters))
        np.testing.assert_allclose(
            np.asarray(out), np.asarray(ref), rtol=1e-5, atol=1e-5
        )

    print("KERNEL_OK")
</pallas_src>

<mosaic_0001>
module attributes {stable_mosaic.version = 11 : i64} {
  func.func @_idwt_fused_kernel(%arg0: i32, %arg1: i32, %arg2: i32, %arg3: memref<2x64x128xf32, #tpu.memory_space<vmem>>, %arg4: memref<2x32x16xf32, #tpu.memory_space<vmem>>, %arg5: memref<1x16x64xf32, #tpu.memory_space<vmem>>, %arg6: memref<1x16x64xf32, #tpu.memory_space<vmem>>, %arg7: memref<1x16x64xf32, #tpu.memory_space<vmem>>, %arg8: memref<1x16x64xf32, #tpu.memory_space<vmem>>, %arg9: memref<1x32x128xf32, #tpu.memory_space<vmem>>) attributes {dimension_semantics = [#tpu.dimension_semantics<parallel>, #tpu.dimension_semantics<parallel>, #tpu.dimension_semantics<parallel>], iteration_bounds = array<i64: 2, 1, 1>, scalar_prefetch = 0 : i64, scratch_operands = 0 : i64, tpu.core_type = #tpu.core_type<tc>, window_params = [{pipeline_mode = #tpu.pipeline_mode<synchronous>, transform_indices = @transform_0, window_bounds = array<i64: 2, 64, 128>}, {pipeline_mode = #tpu.pipeline_mode<synchronous>, transform_indices = @transform_1, window_bounds = array<i64: 2, 32, 16>}, {transform_indices = @transform_2, window_bounds = array<i64: 1, 16, 64>}, {transform_indices = @transform_3, window_bounds = array<i64: 1, 16, 64>}, {transform_indices = @transform_4, window_bounds = array<i64: 1, 16, 64>}, {transform_indices = @transform_5, window_bounds = array<i64: 1, 16, 64>}, {transform_indices = @transform_6, window_bounds = array<i64: 1, 32, 128>}]} {
    %c0 = arith.constant 0 : index
    %c0_0 = arith.constant 0 : index
    %c0_1 = arith.constant 0 : index
    %0 = vector.load %arg5[%c0, %c0_0, %c0_1] : memref<1x16x64xf32, #tpu.memory_space<vmem>>, vector<1x16x64xf32>
    %1 = vector.shape_cast %0 : vector<1x16x64xf32> to vector<16x64xf32>
    %c0_2 = arith.constant 0 : index
    %c0_3 = arith.constant 0 : index
    %c0_4 = arith.constant 0 : index
    %2 = vector.load %arg6[%c0_2, %c0_3, %c0_4] : memref<1x16x64xf32, #tpu.memory_space<vmem>>, vector<1x16x64xf32>
    %3 = vector.shape_cast %2 : vector<1x16x64xf32> to vector<16x64xf32>
    %c0_5 = arith.constant 0 : index
    %c0_6 = arith.constant 0 : index
    %c0_7 = arith.constant 0 : index
    %4 = vector.load %arg7[%c0_5, %c0_6, %c0_7] : memref<1x16x64xf32, #tpu.memory_space<vmem>>, vector<1x16x64xf32>
    %5 = vector.shape_cast %4 : vector<1x16x64xf32> to vector<16x64xf32>
    %c0_8 = arith.constant 0 : index
    %c0_9 = arith.constant 0 : index
    %c0_10 = arith.constant 0 : index
    %6 = vector.load %arg8[%c0_8, %c0_9, %c0_10] : memref<1x16x64xf32, #tpu.memory_space<vmem>>, vector<1x16x64xf32>
    %7 = vector.shape_cast %6 : vector<1x16x64xf32> to vector<16x64xf32>
    %8 = arith.addf %1, %7 : vector<16x64xf32>
    %9 = arith.subf %1, %7 : vector<16x64xf32>
    %10 = arith.addf %3, %5 : vector<16x64xf32>
    %11 = arith.subf %3, %5 : vector<16x64xf32>
    %c0_11 = arith.constant 0 : index
    %c0_12 = arith.constant 0 : index
    %c0_13 = arith.constant 0 : index
    %12 = vector.load %arg3[%c0_11, %c0_12, %c0_13] : memref<2x64x128xf32, #tpu.memory_space<vmem>>, vector<1x64x128xf32>
    %13 = vector.shape_cast %12 : vector<1x64x128xf32> to vector<64x128xf32>
    %c1 = arith.constant 1 : index
    %c0_14 = arith.constant 0 : index
    %c0_15 = arith.constant 0 : index
    %14 = vector.load %arg3[%c1, %c0_14, %c0_15] : memref<2x64x128xf32, #tpu.memory_space<vmem>>, vector<1x64x128xf32>
    %15 = vector.shape_cast %14 : vector<1x64x128xf32> to vector<64x128xf32>
    %16 = arith.addf %8, %10 : vector<16x64xf32>
    %cst = arith.constant dense<0.000000e+00> : vector<16x128xf32>
    %17 = tpu.matmul %16, %13, %cst {dimension_numbers = #tpu.dot_dimension_numbers<[1], [0], [0], [1], [0, 0, 1, 1], [], []>} : vector<16x64xf32>, vector<64x128xf32>, vector<16x128xf32> -> vector<16x128xf32>
    %18 = arith.subf %9, %11 : vector<16x64xf32>
    %cst_16 = arith.constant dense<0.000000e+00> : vector<16x128xf32>
    %19 = tpu.matmul %18, %15, %cst_16 {dimension_numbers = #tpu.dot_dimension_numbers<[1], [0], [0], [1], [0, 0, 1, 1], [], []>} : vector<16x64xf32>, vector<64x128xf32>, vector<16x128xf32> -> vector<16x128xf32>
    %20 = arith.addf %17, %19 : vector<16x128xf32>
    %21 = arith.addf %9, %11 : vector<16x64xf32>
    %cst_17 = arith.constant dense<0.000000e+00> : vector<16x128xf32>
    %22 = tpu.matmul %21, %13, %cst_17 {dimension_numbers = #tpu.dot_dimension_numbers<[1], [0], [0], [1], [0, 0, 1, 1], [], []>} : vector<16x64xf32>, vector<64x128xf32>, vector<16x128xf32> -> vector<16x128xf32>
    %23 = arith.subf %8, %10 : vector<16x64xf32>
    %cst_18 = arith.constant dense<0.000000e+00> : vector<16x128xf32>
    %24 = tpu.matmul %23, %15, %cst_18 {dimension_numbers = #tpu.dot_dimension_numbers<[1], [0], [0], [1], [0, 0, 1, 1], [], []>} : vector<16x64xf32>, vector<64x128xf32>, vector<16x128xf32> -> vector<16x128xf32>
    %25 = arith.addf %22, %24 : vector<16x128xf32>
    %26 = vector.shape_cast %20 : vector<16x128xf32> to vector<1x16x128xf32>
    %27 = vector.shape_cast %25 : vector<16x128xf32> to vector<1x16x128xf32>
    %c0_19 = arith.constant 0 : index
    %c0_20 = arith.constant 0 : index
    %c0_21 = arith.constant 0 : index
    %28 = vector.load %arg4[%c0_19, %c0_20, %c0_21] : memref<2x32x16xf32, #tpu.memory_space<vmem>>, vector<1x32x16xf32>
    %29 = vector.shape_cast %28 : vector<1x32x16xf32> to vector<32x16xf32>
    %c1_22 = arith.constant 1 : index
    %c0_23 = arith.constant 0 : index
    %c0_24 = arith.constant 0 : index
    %30 = vector.load %arg4[%c1_22, %c0_23, %c0_24] : memref<2x32x16xf32, #tpu.memory_space<vmem>>, vector<1x32x16xf32>
    %31 = vector.shape_cast %30 : vector<1x32x16xf32> to vector<32x16xf32>
    %32 = vector.shape_cast %26 : vector<1x16x128xf32> to vector<16x128xf32>
    %cst_25 = arith.constant dense<0.000000e+00> : vector<32x128xf32>
    %33 = tpu.matmul %29, %32, %cst_25 {dimension_numbers = #tpu.dot_dimension_numbers<[1], [0], [0], [1], [0, 0, 1, 1], [], []>} : vector<32x16xf32>, vector<16x128xf32>, vector<32x128xf32> -> vector<32x128xf32>
    %34 = vector.shape_cast %27 : vector<1x16x128xf32> to vector<16x128xf32>
    %cst_26 = arith.constant dense<0.000000e+00> : vector<32x128xf32>
    %35 = tpu.matmul %31, %34, %cst_26 {dimension_numbers = #tpu.dot_dimension_numbers<[1], [0], [0], [1], [0, 0, 1, 1], [], []>} : vector<32x16xf32>, vector<16x128xf32>, vector<32x128xf32> -> vector<32x128xf32>
    %36 = arith.addf %33, %35 : vector<32x128xf32>
    %c0_27 = arith.constant 0 : index
    %c0_28 = arith.constant 0 : index
    %c0_29 = arith.constant 0 : index
    %37 = vector.load %arg9[%c0_27, %c0_28, %c0_29] : memref<1x32x128xf32, #tpu.memory_space<vmem>>, vector<1x32x128xf32>
    %38 = vector.shape_cast %37 : vector<1x32x128xf32> to vector<32x128xf32>
    %39 = vector.shape_cast %36 : vector<32x128xf32> to vector<1x32x128xf32>
    tpu.vector_store %arg9[%c0_27, %c0_28, %c0_29], %39 {strides = array<i32>} : memref<1x32x128xf32, #tpu.memory_space<vmem>>, vector<1x32x128xf32>,
    return
  }
  func.func @transform_0(%arg0: i32, %arg1: i32, %arg2: i32) -> (i32, i32, i32) {
    %c0_i32 = arith.constant 0 : i32
    %c0_i32_0 = arith.constant 0 : i32
    %c0_i32_1 = arith.constant 0 : i32
    %c0_i32_2 = arith.constant 0 : i32
    return %c0_i32, %c0_i32_0, %c0_i32_1 : i32, i32, i32
  }
  func.func @transform_1(%arg0: i32, %arg1: i32, %arg2: i32) -> (i32, i32, i32) {
    %c0_i32 = arith.constant 0 : i32
    %c0_i32_0 = arith.constant 0 : i32
    %c0_i32_1 = arith.constant 0 : i32
    %c0_i32_2 = arith.constant 0 : i32
    return %c0_i32, %c0_i32_0, %c0_i32_1 : i32, i32, i32
  }
  func.func @transform_2(%arg0: i32, %arg1: i32, %arg2: i32) -> (i32, i32, i32) {
    %c0_i32 = arith.constant 0 : i32
    return %arg0, %arg1, %arg2 : i32, i32, i32
  }
  func.func @transform_3(%arg0: i32, %arg1: i32, %arg2: i32) -> (i32, i32, i32) {
    %c0_i32 = arith.constant 0 : i32
    return %arg0, %arg1, %arg2 : i32, i32, i32
  }
  func.func @transform_4(%arg0: i32, %arg1: i32, %arg2: i32) -> (i32, i32, i32) {
    %c0_i32 = arith.constant 0 : i32
    return %arg0, %arg1, %arg2 : i32, i32, i32
  }
  func.func @transform_5(%arg0: i32, %arg1: i32, %arg2: i32) -> (i32, i32, i32) {
    %c0_i32 = arith.constant 0 : i32
    return %arg0, %arg1, %arg2 : i32, i32, i32
  }
  func.func @transform_6(%arg0: i32, %arg1: i32, %arg2: i32) -> (i32, i32, i32) {
    %c0_i32 = arith.constant 0 : i32
    return %arg0, %arg1, %arg2 : i32, i32, i32
  }
}

</mosaic_0001>

<bundles_post_ra>
// kernel: tpu_custom_call.1
= control target key start
LH: loop header
LB: loop body
LE: loop exit
PB: predicated region body
PF: predicated region fallthrough
CT: control target
= control target key end

     0   :  { %s1990_s0 = inlined_call_operand.hbm [shape: f32[2,64,128], index: 0, kind: input, shape index: {}]   ;;  %s1991_s1 = inlined_call_operand.vmem [shape: f32[2,32,16], index: 1, kind: input, shape index: {}]   ;;  %s1992_s2 = inlined_call_operand.vmem [shape: f32[2,16,64], index: 2, kind: input, shape index: {}]   ;;  %s1993_s3 = inlined_call_operand.vmem [shape: f32[2,16,64], index: 3, kind: input, shape index: {}]   ;;  %s1994_s4 = inlined_call_operand.vmem [shape: f32[2,16,64], index: 4, kind: input, shape index: {}]   ;;  %s1995_s5 = inlined_call_operand.hbm [shape: f32[2,16,64], index: 5, kind: input, shape index: {}]   ;;  %s1996_s6 = inlined_call_operand.hbm [shape: f32[2,32,128], index: 6, kind: output, shape index: {}]  }
   0x1   :  { %2002 = sst [smem:[#allocation13_spill]] %s1990_s0 }
   0x2   :  { %11 = vsyncpa [#allocation3], 0 }
   0x3   :  { %12 = vsyncpa [#allocation6], 0 }
   0x4   :  { %14 = vsyncpa [#allocation6 + $0x1], 0 }
   0x5   :  { %15 = vsyncpa [#allocation4], 0 }
   0x6   :  { %17 = vsyncpa [#allocation4 + $0x1], 0  ;;  %s1671_s21 = smov 0   ;;  %s1673_s22 = smov 0  }
   0x7   :  { %s1675_s23 = smov 0   ;;  %s1677_s24 = smov 0  }
   0x8   :  { %s1679_s25 = smov 0   ;;  %s1681_s26 = smov 0  }
   0x9 LB: > { %2003 = sst [smem:[#allocation11_spill]] %s1623_s25  ;;  %s1216_s27 = sadd.s32 4294967295, %s1627_s26   ;;  %s1627_s26 = sphi %s1681_s26, %s23_s26   ;;  %s1623_s25 = sphi %s1679_s25, %s2021_s25   ;;  %s1619_s24 = sphi %s1677_s24, %s2020_s24   ;;  %s1615_s23 = sphi %s1675_s23, %s2024_s23   ;;  %s1611_s22 = sphi %s1673_s22, %s2023_s22   ;;  %s1607_s21 = sphi %s1671_s21, %s2022_s21  }
   0xa   : > { %s1217_s28 = sadd.s32 4294967294, %s1627_s26   ;;  %p198_p0 = scmp.ne.s32.totalorder %s1611_s22, %s1607_s21 }
   0xb   : > { %p1705_p1 = scmp.eq.s32.totalorder %s1216_s27, 0  ;;  %p1709_p2 = scmp.eq.s32.totalorder %s1216_s27, 1 }
   0xc   : > { %p232_p3 = scmp.eq.s32.totalorder %s1217_s28, 1  ;;  %p1218_p5 = scmp.ge.s32.totalorder %s1627_s26, 1 }
   0xd   : > { %p1715_p4 = por %p1705_p1, %p198_p0  ;;  %p239_p7 = scmp.lt.s32.totalorder %s1627_s26, 3 }
   0xe   : > { %p1720_p6 = por %p232_p3, %p198_p0  ;;  %s1629_s10 = smov [#allocation2]  }
   0xf   : > { %s2006_s7 = scalar_select %p1715_p4, 1, 0 }
  0x10   : > { %s2007_s8 = scalar_select %p1720_p6, 1, 0 }
  0x11   : > { %p1725_p8 = pnand %p1218_p5, %p239_p7  ;;  %s251_s11 = sshll.u32 %s1629_s10, 4  ;;  %s252_s11 = int_to_ptr.vmem [resolvable:$true] %s251_s11 }
  0x12   : > { %s42_s13 = sadd.s32 1, %s1623_s25  ;;  %s1500_s14 = scalar_lea.vmem %s252_s11, 2048 }
  0x13   : > { %p1420_p9 = pneg %p1725_p8  ;;  %p1501_p13 = scmp.ne.s32.totalorder %s252_s11, %s1500_s14 }
  0x14   : > { %p1508_p5 = scmp.lt.s32.totalorder %s252_s11, %s252_s11  ;;  %p1509_p7 = scmp.lt.s32.totalorder %s1500_s14, %s1500_s14 }
  0x15   : > { %p1734_p11 = pnand %p1420_p9, %p1705_p1 }
  0x16   : > { %p1510_p6 = por %p1509_p7, %p1508_p5 }
  0x17   : > { %p1491_p12 = pneg %p1734_p11 }
  0x19   : > { %p1503_p0 = pnand %p1501_p13, %p1491_p12 }
  0x1b   : > { %p1504_p3 = pneg %p1503_p0 }
  0x1d   : > { %p1511_p4 = pnand %p1510_p6, %p1504_p3 }
  0x1f   : > { %1514 = shalt.err (!%p1511_p4)
}
  0x20   : > { %s1998_s15 = smov 128   ;;  %s1999_s16 = smov 8  }
  0x21   : > { %s2010_s0 = sld [smem:[#allocation13_spill]]  ;;  %p44_p4 = scmp.ge.s32.totalorder %s42_s13, 2 }
  0x22   : > { %s185_s19 = sadd.s32 1, %s1615_s23  ;;  %p192_p6 = scmp.ne.s32.totalorder %s1615_s23, %s1611_s22 }
  0x23   : > { %p193_p9 = scmp.eq.s32.totalorder %s1627_s26, 0  ;;  %s2026_s13 = smov (%p44_p4, %s42_s13), 0 }
  0x24   : > { %2011 = sst [smem:[#allocation12_spill]] %s2026_s13  ;;  %p1761_p13 = por %p1709_p2, %p192_p6 }
  0x25   : > { %p1755_p12 = por %p193_p9, %p192_p6  ;;  %s178_s28 = ssub.s32 %s1623_s25, %s2026_s13 }
  0x26   : > { %p1433_p0 = scmp.lt.s32.totalorder %s1627_s26, 2  ;;  %s316_s10 = sand.u32 1, %s1615_s23  }
  0x27   : > { %1423 = dma.hbm_to_vmem [thread:$0]  (!%p1734_p11), %s2010_s0, 2048, %s252_s11, [#allocation3], %s1998_s15, %s1998_s15, %s1999_s16  }
  0x28   : > { %p183_p11 = scmp.eq.s32.totalorder %s178_s28, 0  ;;  %s1221_s11 = sshll.u32 %s316_s10, 4 }
  0x29   : > { %s1259_s14 = sshll.u32 %s1623_s25, 8  ;;  %s320_s16 = scalar_lea.vmem [#allocation5], %s1221_s11 }
  0x2a   : > { %s1770_s12 = scalar_select %p183_p11, %s1615_s23, %s185_s19  }
  0x2b   : > { %s329_s15 = scalar_lea.hbm %s1995_s5, %s1259_s14  ;;  %s330_s0 = sshll.u32 %s320_s16, 4  ;;  %s331_s0 = int_to_ptr.vmem [resolvable:$true] %s330_s0 }
  0x2c   : > { %p1778_p2 = pnand %p1433_p0, %p1755_p12  ;;  %s317_s13 = scalar_lea.sflag [#allocation6], %s316_s10 }
  0x2d   : > { %s1528_s28 = scalar_lea.vmem %s331_s0, 256  ;;  %s1632_s19 = smov [#allocation5]  }
  0x2e   : > { %p1517_p3 = pneg %p1778_p2  ;;  %p1529_p5 = scmp.ne.s32.totalorder %s331_s0, %s1528_s28 }
  0x2f   : > { %s1533_s25 = sshll.u32 %s1632_s19, 4  ;;  %s1534_s25 = int_to_ptr.vmem [resolvable:$false] %s1533_s25 }
  0x30   : > { %p1531_p7 = pnand %p1529_p5, %p1517_p3  ;;  %s1535_s14 = scalar_lea.vmem %s1534_s25, 512 }
  0x31   : > { %p1536_p6 = scmp.lt.s32.totalorder %s331_s0, %s1534_s25  ;;  %p1537_p9 = scmp.lt.s32.totalorder %s1535_s14, %s1528_s28 }
  0x32   : > { %p1532_p4 = pneg %p1531_p7 }
  0x33   : > { %p1538_p11 = por %p1537_p9, %p1536_p6 }
  0x35   : > { %p1539_p10 = pnand %p1538_p11, %p1532_p4 }
  0x37   : > { %1542 = shalt.err (!%p1539_p10)
}
  0x38   : > { %s2015_s16 = smov 8   ;;  %s2016_s20 = smov 128  }
  0x39   : > { %1427 = dma.hbm_to_vmem [thread:$0]  (!%p1778_p2), %s329_s15, 256, %s331_s0, %s317_s13, %s2016_s20, %s2016_s20, %s2015_s16  }
  0x3a   : > { %342 = sbr.rel (%p1725_p8) target bundleno = 519 (0x207), region = 44 }
  0x3f   : > { %1594 = dma.done.wait (%p1705_p1), [#allocation3], 2048  }
  0x40   : > { %1596 = vsyncadd (%p1705_p1), [#allocation3], 4294965248  ;;  %s1796_s25 = sand.u32 1, %s1611_s22   ;;  %p2017_p10 = scmp.ne.s32.totalorder %s2006_s7, 0 }
  0x41   : > { %s1226_s10 = sshll.u32 %s1796_s25, 4  ;;  %s349_s11 = scalar_lea.sflag [#allocation6], %s1796_s25 }
  0x42   : > { %s1800_s17 = scalar_lea.vmem [#allocation5], %s1226_s10 }
  0x43   : > { %1598 = dma.done.wait (%p2017_p10), %s349_s11, 256  }
  0x44   : > { %1600 = vsyncadd (%p2017_p10), %s349_s11, 4294967040  ;;  %p418_p8 = scmp.lt.s32.totalorder %s1619_s24, 1  ;;  %v1808_v0 = vld [vmem:[#allocation2 + $0x78] sm:$0xff]  ;;  %v1812_v2 = vld [vmem:[#allocation2 + $0x70] sm:$0xff]  ;;  %vm495_vm0 = vcmask 523264   ;;  %vm833_vm1 = vcmask 130048  }
  0x45   : > { %v1810_v1 = vld [vmem:[#allocation2 + $0x38] sm:$0xff]  ;;  %1316 = vmatprep.subr.mxu0 %v1808_v0  ;;  %v1816_v3 = vld [vmem:[#allocation2 + $0x30] sm:$0xff]  ;;  %v1820_v4 = vld [vmem:[#allocation2 + $0x68] sm:$0xff]  ;;  %s1227_s16 = sshll.u32 %s1796_s25, 5  ;;  %s1263_s11 = sshll.u32 %s1619_s24, 9 }
  0x46   : > { %s419_s0 = scalar_select %p418_p8, %s1619_s24, 1  ;;  %1335 = vmatprep.subr.mxu1 %v1810_v1  ;;  %1317 = vmatpush3.msra.mxu0 %v1808_v0  ;;  %v1822_v5 = vld [vmem:[#allocation2 + $0x28] sm:$0xff]  ;;  %v1837_v6 = vld [vmem:[#allocation2 + $0x60] sm:$0xff]  ;;  %v1841_v8 = vld [vmem:[#allocation2 + $0x58] sm:$0xff] }
  0x47   : > { %1336 = vmatpush3.msra.mxu1 %v1810_v1  ;;  %1318 = vmatprep.subr.mxu0 %v1812_v2  ;;  %v1839_v7 = vld [vmem:[#allocation2 + $0x20] sm:$0xff]  ;;  %v1845_v9 = vld [vmem:[#allocation2 + $0x18] sm:$0xff]  ;;  %v485_v18 = vld [vmem:[#allocation2 + $0x50] sm:$0xff]  ;;  %s416_s20 = scalar_lea.vmem [#allocation7], %s1227_s16  ;;  %s1033_s7 = scalar_lea.sflag [#allocation4], %s1796_s25 }
  0x48   : > { %s1260_s29 = sshll.u32 %s419_s0, 4  ;;  %1337 = vmatprep.subr.mxu1 %v1816_v3  ;;  %1319 = vmatpush3.msra.mxu0 %v1812_v2  ;;  %v464_v16 = vld [vmem:[%s1800_s17] sm:$0xff]  ;;  %v465_v17 = vld [vmem:[%s1800_s17 + $0x8] sm:$0xff]  ;;  %s1049_s10 = sshll.u32 %s416_s20, 4  ;;  %s1937_s10 = int_to_ptr.vmem [resolvable:$true] %s1049_s10 }
  0x49   : > { %s428_s13 = scalar_lea.vmem %s1992_s2, %s1260_s29  ;;  %s441_s30 = scalar_lea.vmem %s1993_s3, %s1260_s29  ;;  %1338 = vmatpush3.msra.mxu1 %v1816_v3  ;;  %1320 = vmatprep.subr.mxu0 %v1820_v4  ;;  %v476_v19 = vld [vmem:[#allocation2 + $0x10] sm:$0xff]  ;;  %v484_v25 = vld [vmem:[#allocation2 + $0x48] sm:$0xff]  ;;  %v483_v30 = vld [vmem:[#allocation2 + $0x40] sm:$0xff] }
  0x4a   : > { %s454_s14 = scalar_lea.vmem %s1994_s4, %s1260_s29  ;;  %1339 = vmatprep.subr.mxu1 %v1822_v5  ;;  %v458_v10 = vld [vmem:[%s428_s13] sm:$0xff]  ;;  %v459_v11 = vld [vmem:[%s428_s13 + $0x8] sm:$0xff]  ;;  %1321 = vmatpush3.msra.mxu0 %v1820_v4  ;;  %v826_v49 = vld [vmem:[%s1991_s1 + $0x10] sm:$0xff]  ;;  %s1942_s29 = scalar_lea.hbm %s1996_s6, %s1263_s11 }
  0x4b   : > { %1340 = vmatpush3.msra.mxu1 %v1822_v5  ;;  %v460_v12 = vld [vmem:[%s441_s30] sm:$0xff]  ;;  %v461_v13 = vld [vmem:[%s441_s30 + $0x8] sm:$0xff]  ;;  %1322 = vmatprep.subr.mxu0 %v1837_v6  ;;  %v468_v20 = vsub.f32 %v458_v10, %v464_v16  ;;  %v1857_v22 = vadd.f32 %v465_v17, %v459_v11  ;;  %v1859_v23 = vadd.f32 %v464_v16, %v458_v10  ;;  %v827_v50 = vld [vmem:[%s1991_s1 + $0x18] sm:$0xff]  ;;  %s1543_s24 = scalar_lea.vmem %s1937_s10, 512  ;;  %s1633_s9 = smov [#allocation7]  }
  0x4c   : > { %v462_v14 = vld [vmem:[%s454_s14] sm:$0xff]  ;;  %1341 = vmatprep.subr.mxu1 %v1839_v7  ;;  %v463_v15 = vld [vmem:[%s454_s14 + $0x8] sm:$0xff]  ;;  %1323 = vmatpush3.msra.mxu0 %v1837_v6  ;;  %v469_v27 = vsub.f32 %v459_v11, %v465_v17  ;;  %v1244_v58 = vld [vmem:[%s1991_s1 + $0x30] sm:$0xff]  ;;  %p1544_p1 = scmp.ne.s32.totalorder %s1937_s10, %s1543_s24  ;;  %s1547_s13 = sshll.u32 %s1633_s9, 4  ;;  %s1548_s13 = int_to_ptr.vmem [resolvable:$false] %s1547_s13 }
  0x4d   : > { %1342 = vmatpush3.msra.mxu1 %v1839_v7  ;;  %v472_v21 = vsub.f32 %v460_v12, %v462_v14  ;;  %1324 = vmatprep.subr.mxu0 %v1841_v8  ;;  %v1861_v24 = vadd.f32 %v462_v14, %v460_v12  ;;  %v475_v26 = vld [vmem:[#allocation2 + $0x8] sm:$0xff]  ;;  %v1865_v28 = vadd.f32 %v463_v15, %v461_v13  ;;  %v474_v31 = vld [vmem:[#allocation2] sm:$0xff]  ;;  %v1245_v59 = vld [vmem:[%s1991_s1 + $0x38] sm:$0xff]  ;;  %s1549_s15 = scalar_lea.vmem %s1548_s13, 1024  ;;  %p1550_p2 = scmp.lt.s32.totalorder %s1937_s10, %s1548_s13 }
  0x4e   : > { %1343 = vmatprep.subr.mxu1 %v1845_v9  ;;  %1325 = vmatpush3.msra.mxu0 %v1841_v8  ;;  %v473_v29 = vsub.f32 %v461_v13, %v463_v15  ;;  %v824_v40 = vld [vmem:[%s1991_s1] sm:$0xff]  ;;  %v825_v48 = vld [vmem:[%s1991_s1 + $0x8] sm:$0xff]  ;;  %p1545_p12 = pnand %p1544_p1, %p1761_p13  ;;  %p1551_p3 = scmp.lt.s32.totalorder %s1549_s15, %s1543_s24 }
  0x4f   : > { %1344 = vmatpush3.msra.mxu1 %v1845_v9  ;;  %1326 = vmatprep.subr.mxu0 %v485_v18  ;;  %v493_v32 = vsub.f32 %v468_v20, %v472_v21  ;;  %v491_v33 = vadd.f32 %v1861_v24, %v1859_v23  ;;  %v492_v35 = vadd.f32 %v1865_v28, %v1857_v22  ;;  %v1242_v41 = vld [vmem:[%s1991_s1 + $0x20] sm:$0xff]  ;;  %v1243_v57 = vld [vmem:[%s1991_s1 + $0x28] sm:$0xff] }
  0x50   : > { %1345 = vmatprep.subr.mxu1 %v476_v19  ;;  %1327 = vmatpush3.msra.mxu0 %v485_v18  ;;  %v494_v34 = vsub.f32 %v469_v27, %v473_v29  ;;  %v660_v36 = vsub.f32 %v1859_v23, %v1861_v24  ;;  %v658_v37 = vadd.f32 %v472_v21, %v468_v20  ;;  %p1546_p0 = pneg %p1545_p12  ;;  %p1552_p5 = por %p1551_p3, %p1550_p2 }
  0x51   : > { %1346 = vmatpush3.msra.mxu1 %v476_v19  ;;  %1328 = vmatprep.subr.mxu0 %v484_v25  ;;  %v659_v38 = vadd.f32 %v473_v29, %v469_v27  ;;  %v661_v39 = vsub.f32 %v1857_v22, %v1865_v28 }
  0x52   : > { %1347 = vmatprep.subr.mxu1 %v475_v26  ;;  %1329 = vmatpush3.msra.mxu0 %v484_v25  ;;  %p1553_p7 = pnand %p1552_p5, %p1546_p0 }
  0x53   : > { %1348 = vmatpush3.msra.mxu1 %v475_v26  ;;  %1330 = vmatprep.subr.mxu0 %v483_v30 }
  0x54   : > { %1349 = vmatprep.subr.mxu1 %v474_v31  ;;  %1331 = vmatpush3.msra.mxu0 %v483_v30 }
  0x55   : > { %1332 = vmatprep.mubr.msk.f32.mxu0 %vm495_vm0, %v493_v32  ;;  %1350 = vmatpush3.msra.mxu1 %v474_v31 }
  0x56   : > { %1351 = vmatprep.mubr.msk.f32.mxu1 %vm495_vm0, %v491_v33  ;;  %1333 = vmatmul.mubr.msk.f32.vlgmr.msra.gmra.mxu0 %vm495_vm0, %v494_v34 }
  0x57   : > { %1352 = vmatmul.mubr.msk.f32.vlgmr.msra.gmra.mxu1 %vm495_vm0, %v492_v35  ;;  %1354 = vmatprep.subr.mxu0 %v1808_v0 }
  0x58   : > { %1373 = vmatprep.subr.mxu1 %v1810_v1  ;;  %1355 = vmatpush3.msra.mxu0 %v1808_v0 }
  0x59   : > { %1374 = vmatpush3.msra.mxu1 %v1810_v1  ;;  %1356 = vmatprep.subr.mxu0 %v1812_v2 }
  0x5a   : > { %1375 = vmatprep.subr.mxu1 %v1816_v3  ;;  %1357 = vmatpush3.msra.mxu0 %v1812_v2 }
  0x5b   : > { %1376 = vmatpush3.msra.mxu1 %v1816_v3  ;;  %1358 = vmatprep.subr.mxu0 %v1820_v4 }
  0x5c   : > { %1377 = vmatprep.subr.mxu1 %v1822_v5  ;;  %1359 = vmatpush3.msra.mxu0 %v1820_v4 }
  0x5d   : > { %1378 = vmatpush3.msra.mxu1 %v1822_v5  ;;  %1360 = vmatprep.subr.mxu0 %v1837_v6 }
  0x5e   : > { %1379 = vmatprep.subr.mxu1 %v1839_v7  ;;  %1361 = vmatpush3.msra.mxu0 %v1837_v6 }
  0x5f   : > { %1380 = vmatpush3.msra.mxu1 %v1839_v7  ;;  %1362 = vmatprep.subr.mxu0 %v1841_v8 }
  0x60   : > { %1381 = vmatprep.subr.mxu1 %v1845_v9  ;;  %1363 = vmatpush3.msra.mxu0 %v1841_v8 }
  0x61   : > { %1382 = vmatpush3.msra.mxu1 %v1845_v9  ;;  %1364 = vmatprep.subr.mxu0 %v485_v18 }
  0x62   : > { %1383 = vmatprep.subr.mxu1 %v476_v19  ;;  %1365 = vmatpush3.msra.mxu0 %v485_v18 }
  0x63   : > { %1384 = vmatpush3.msra.mxu1 %v476_v19  ;;  %1366 = vmatprep.subr.mxu0 %v484_v25 }
  0x64   : > { %1385 = vmatprep.subr.mxu1 %v475_v26  ;;  %1367 = vmatpush3.msra.mxu0 %v484_v25 }
  0x65   : > { %1386 = vmatpush3.msra.mxu1 %v475_v26  ;;  %1368 = vmatprep.subr.mxu0 %v483_v30 }
  0x66   : > { %1387 = vmatprep.subr.mxu1 %v474_v31  ;;  %1369 = vmatpush3.msra.mxu0 %v483_v30 }
  0x67   : > { %1370 = vmatprep.mubr.msk.f32.mxu0 %vm495_vm0, %v660_v36  ;;  %1388 = vmatpush3.msra.mxu1 %v474_v31 }
  0x68   : > { %1389 = vmatprep.mubr.msk.f32.mxu1 %vm495_vm0, %v658_v37  ;;  %1371 = vmatmul.mubr.msk.f32.vlgmr.msra.gmra.mxu0 %vm495_vm0, %v661_v39 }
  0x69   : > { %1390 = vmatmul.mubr.msk.f32.vlgmr.msra.gmra.mxu1 %vm495_vm0, %v659_v38  ;;  %1396 = vmatprep.mubr.msk.f32.mxu0 %vm833_vm1, %v1242_v41 }
  0x6a   : > { %1406 = vmatprep.mubr.msk.f32.mxu1 %vm833_vm1, %v824_v40 }
 0x116   : > { %v1334_v42 = vpop.f32.mrf.mxu0 }
 0x117   : > { %v1353_v43 = vpop.f32.mrf.mxu1 }
 0x118   : > { %v655_v44 = vadd.f32 %v1353_v43, %v1334_v42  ;;  %v568_v45 = vpop.f32.mrf.mxu0 }
 0x119   : > { %v649_v46 = vpop.f32.mrf.mxu1 }
 0x11a   : > { %v650_v47 = vadd.f32 %v649_v46, %v568_v45  ;;  %1402 = vmatprep.subr.mxu1 %v655_v44 }
 0x11b   : > { %1403 = vmatpush3.msra.mxu1 %v655_v44 }
 0x11c   : > { %1404 = vmatprep.subr.mxu1 %v650_v47 }
 0x11d   : > { %1405 = vmatpush3.msra.mxu1 %v650_v47 }
 0x11e   : > { %1407 = vmatmul.mubr.msk.f32.vlgmr.msra.gmra.mxu1 %vm833_vm1, %v825_v48 }
 0x11f   : > { %1409 = vmatprep.mubr.msk.f32.mxu1 %vm833_vm1, %v826_v49 }
 0x122   : > { %1410 = vmatmul.mubr.msk.f32.gmra.mxu1 %vm833_vm1, %v827_v50 }
 0x128   : > { %v1372_v51 = vpop.f32.mrf.mxu0 }
 0x129   : > { %v1391_v52 = vpop.f32.mrf.mxu1 }
 0x12a   : > { %v821_v53 = vadd.f32 %v1391_v52, %v1372_v51  ;;  %v734_v54 = vpop.f32.mrf.mxu0 }
 0x12b   : > { %v815_v55 = vpop.f32.mrf.mxu1 }
 0x12c   : > { %v816_v56 = vadd.f32 %v815_v55, %v734_v54  ;;  %1392 = vmatprep.subr.mxu0 %v821_v53 }
 0x12d   : > { %1393 = vmatpush3.msra.mxu0 %v821_v53 }
 0x12e   : > { %1394 = vmatprep.subr.mxu0 %v816_v56 }
 0x12f   : > { %1395 = vmatpush3.msra.mxu0 %v816_v56 }
 0x130   : > { %1397 = vmatmul.mubr.msk.f32.vlgmr.msra.gmra.mxu0 %vm833_vm1, %v1243_v57 }
 0x131   : > { %1399 = vmatprep.mubr.msk.f32.mxu0 %vm833_vm1, %v1244_v58 }
 0x134   : > { %1400 = vmatmul.mubr.msk.f32.gmra.mxu0 %vm833_vm1, %v1245_v59 }
 0x1de   : > { %v1408_v60 = vpop.f32.mrf.mxu1 }
 0x1e0   : > { %v1009_v61 = vpop.f32.mrf.mxu1 }
 0x1e2   : > { %v1411_v1 = vpop.f32.mrf.mxu1 }
 0x1e4   : > { %v1019_v5 = vpop.f32.mrf.mxu1 }
 0x1f0   : > { %v1398_v62 = vpop.f32.mrf.mxu0 }
 0x1f1   : > { %v1015_v63 = vadd.f32 %v1408_v60, %v1398_v62 }
 0x1f2   : > { %v912_v0 = vpop.f32.mrf.mxu0 }
 0x1f3   : > { %1029 = vst [vmem:[%s416_s20 + $0x8] sm:$0xff] %v1015_v63  ;;  %v1010_v2 = vadd.f32 %v1009_v61, %v912_v0 }
 0x1f4   : > { %v1401_v3 = vpop.f32.mrf.mxu0 }
 0x1f5   : > { %1028 = vst [vmem:[%s416_s20] sm:$0xff] %v1010_v2  ;;  %v1025_v4 = vadd.f32 %v1411_v1, %v1401_v3 }
 0x1f6   : > { %v922_v6 = vpop.f32.mrf.mxu0 }
 0x1f7   : > { %1031 = vst [vmem:[%s416_s20 + $0x18] sm:$0xff] %v1025_v4  ;;  %v1020_v7 = vadd.f32 %v1019_v5, %v922_v6 }
 0x1f9   : > { %1030 = vst [vmem:[%s416_s20 + $0x10] sm:$0xff] %v1020_v7 }
 0x1fa   : > { %1556 = shalt.err (!%p1553_p7)
}
 0x1fb   : > { %s1557_s18 = scalar_lea.hbm %s1942_s29, 512  ;;  %s1561_s19 = scalar_lea.hbm %s1996_s6, 1024 }
 0x1fc   : > { %p1558_p4 = scmp.ne.s32.totalorder %s1942_s29, %s1557_s18  ;;  %p1562_p11 = scmp.lt.s32.totalorder %s1942_s29, %s1996_s6 }
 0x1fd   : > { %p1563_p10 = scmp.lt.s32.totalorder %s1561_s19, %s1557_s18 }
 0x1fe   : > { %p1559_p6 = pnand %p1558_p4, %p1761_p13 }
 0x1ff   : > { %p1564_p8 = por %p1563_p10, %p1562_p11 }
 0x200   : > { %p1560_p9 = pneg %p1559_p6 }
 0x202   : > { %p1565_p1 = pnand %p1564_p8, %p1560_p9 }
 0x204   : > { %1568 = shalt.err (!%p1565_p1)
}
 0x205   : > { %s1634_s20 = smov 128   ;;  %s1635_s11 = smov 8  }
 0x206   : > { %1418 = dma.vmem_to_hbm [thread:$0]  (%p1761_p13), %s1937_s10, 512, %s1942_s29, %s1033_s7, %s1634_s20, %s1634_s20, %s1635_s11  }
 0x207 PF: > { %s1064_s17 = sand.u32 1, %s1607_s21   ;;  %p2018_p12 = scmp.ne.s32.totalorder %s2007_s8, 0 }
 0x208   : > { %p2019_p0 = scmp.ge.s32.totalorder %s1627_s26, 2  ;;  %s1065_s0 = scalar_lea.sflag [#allocation4], %s1064_s17 }
 0x20a   : > { %p1429_p2 = pnand %p2019_p0, %p2018_p12 }
 0x20c   : > { %p1430_p3 = pneg %p1429_p2 }
 0x20e   : > { %1602 = dma.done.wait (%p1430_p3), %s1065_s0, 512  }
 0x20f   : > { %1604 = vsyncadd (%p1430_p3), %s1065_s0, 4294966784  ;;  %s23_s26 = sadd.s32 1, %s1627_s26   ;;  %s2020_s24 = sld [smem:[#allocation11_spill]] }
 0x210   : > { %p20_p5 = scmp.ge.s32.totalorder %s23_s26, 4   ;;  %s2021_s25 = sld [smem:[#allocation12_spill]] }
 0x211   : > { %s2022_s21 = smov %s1611_s22  ;;  %s2023_s22 = smov %s1615_s23 }
 0x212   : > { %s2024_s23 = smov %s1770_s12  ;;  %22 = sbr.rel (!%p20_p5) target bundleno = 9 (0x9), region = 105 }
 0x217   :  { %1070 = vsyncpa [#allocation3], 1 }
 0x218   :  { %1072 = vsyncpa [#allocation3 + $0x1], 1 }
 0x219   :  { %1073 = vsyncpa [#allocation6], 1 }
 0x21a   :  { %1075 = vsyncpa [#allocation6 + $0x1], 1 }
 0x21b   :  { %1076 = vsyncpa [#allocation4], 1 }
 0x21c   :  { %1078 = vsyncpa [#allocation4 + $0x1], 1 }

</bundles_post_ra>
